<compile_context>
chip_gen: v7x
topology: tpu7x:2x2x1
jax: 0.10.0
libtpu: 0.0.40
codegen_flags: <defaults>
</compile_context>

<pallas_src>
import functools

import numpy as np
import jax
import jax.numpy as jnp
from jax.experimental import pallas as pl
from jax.experimental.pallas import tpu as pltpu


# ----------------------------------------------------------------------------
# librosa.filters.mel equivalent (Slaney mel scale, slaney norm) in pure numpy
# ----------------------------------------------------------------------------
def _hz_to_mel(f):
    f = np.asarray(f, dtype=np.float64)
    f_sp = 200.0 / 3.0
    mels = f / f_sp
    min_log_hz = 1000.0
    min_log_mel = min_log_hz / f_sp
    logstep = np.log(6.4) / 27.0
    return np.where(f >= min_log_hz,
                    min_log_mel + np.log(np.maximum(f, 1e-10) / min_log_hz) / logstep,
                    mels)


def _mel_to_hz(m):
    m = np.asarray(m, dtype=np.float64)
    f_sp = 200.0 / 3.0
    freqs = f_sp * m
    min_log_hz = 1000.0
    min_log_mel = min_log_hz / f_sp
    logstep = np.log(6.4) / 27.0
    return np.where(m >= min_log_mel,
                    min_log_hz * np.exp(logstep * (m - min_log_mel)),
                    freqs)


def mel_filterbank(sr, n_fft, n_mels, fmin, fmax):
    if fmax is None:
        fmax = sr / 2.0
    n_freq = n_fft // 2 + 1
    fftfreqs = np.linspace(0.0, sr / 2.0, n_freq)
    mel_pts = np.linspace(_hz_to_mel(fmin), _hz_to_mel(fmax), n_mels + 2)
    mel_f = _mel_to_hz(mel_pts)
    fdiff = np.diff(mel_f)
    ramps = mel_f[:, None] - fftfreqs[None, :]
    weights = np.zeros((n_mels, n_freq), dtype=np.float64)
    for i in range(n_mels):
        lower = -ramps[i] / fdiff[i]
        upper = ramps[i + 2] / fdiff[i + 1]
        weights[i] = np.maximum(0.0, np.minimum(lower, upper))
    enorm = 2.0 / (mel_f[2:n_mels + 2] - mel_f[:n_mels])
    weights *= enorm[:, None]
    return weights.astype(np.float64)


def _round_up(x, m):
    return ((x + m - 1) // m) * m


# ----------------------------------------------------------------------------
# Pallas kernel: one combined DFT matmul + magnitude + mel matmul + log
# ----------------------------------------------------------------------------
def stft_mel_kernel(frames_ref, basis_ref, melT_ref, spec_ref, mel_ref,
                    *, nyq_packed, precision):
    f = frames_ref[...]                                            # (tile, n_fft)
    # Single MXU stream over the combined [win*cos | win*(-sin)] basis.
    out = jnp.dot(f, basis_ref[...],
                  preferred_element_type=jnp.float32,
                  precision=precision)                             # (tile, 2*W) f32
    W = basis_ref.shape[1] // 2
    re = out[:, :W]
    hi = out[:, W:]

    if nyq_packed:
        # Lane 0 of the "sin" half carries the Nyquist cos column (the true sin
        # column at k=0 is identically zero), so mask it out of the imaginary part.
        lane = jax.lax.broadcasted_iota(jnp.int32, hi.shape, 1)
        im = jnp.where(lane == 0, 0.0, hi)
        mag_low = jnp.sqrt(re * re + im * im + 1e-9)               # bins 0..W-1
        hi0 = hi[:, :128]                                          # lane 0 = Nyquist re
        mag_hi = jnp.sqrt(hi0 * hi0 + 1e-9)                        # lane 0 = |Nyquist|
        spec = jnp.concatenate([mag_low, mag_hi], axis=-1)         # (tile, W+128)
    else:
        spec = jnp.sqrt(re * re + hi * hi + 1e-9)                  # (tile, W)

    spec_ref[...] = spec
    mel = jnp.dot(spec.astype(melT_ref.dtype), melT_ref[...],
                  preferred_element_type=jnp.float32,
                  precision=precision)                             # (tile, n_mel_pad)
    mel_ref[...] = jnp.log(jnp.maximum(mel, 1e-5))                 # dynamic range compression


def stft_mel_pallas(frames, basis, melT, spec_w, tile_nf, nyq_packed, precision):
    NF, n_fft = frames.shape
    two_w = basis.shape[1]
    n_mel_pad = melT.shape[1]
    grid = (NF // tile_nf,)
    kernel = functools.partial(stft_mel_kernel,
                               nyq_packed=nyq_packed, precision=precision)
    return pl.pallas_call(
        kernel,
        out_shape=(jax.ShapeDtypeStruct((NF, spec_w), jnp.float32),
                   jax.ShapeDtypeStruct((NF, n_mel_pad), jnp.float32)),
        grid_spec=pltpu.PrefetchScalarGridSpec(
            num_scalar_prefetch=0,
            grid=grid,
            in_specs=[
                pl.BlockSpec((tile_nf, n_fft), lambda i: (i, 0)),      # frames tile
                pl.BlockSpec((n_fft, two_w), lambda i: (0, 0)),        # resident DFT basis
                pl.BlockSpec((spec_w, n_mel_pad), lambda i: (0, 0)),   # resident mel basis
            ],
            out_specs=[
                pl.BlockSpec((tile_nf, spec_w), lambda i: (i, 0)),
                pl.BlockSpec((tile_nf, n_mel_pad), lambda i: (i, 0)),
            ],
        ),
        compiler_params=pltpu.CompilerParams(dimension_semantics=("parallel",)),
    )(frames, basis, melT)


# ----------------------------------------------------------------------------
# TacotronSTFT forward (JAX glue around the Pallas kernel)
# ----------------------------------------------------------------------------
class TacotronSTFTPallas:
    def __init__(self, filter_length, hop_length, win_length, n_mel_channels,
                 sampling_rate, center, mel_fmax, mel_fmin=0.0,
                 compute_dtype=jnp.bfloat16, frame_tile=512):
        assert center is False, "kernel implements the center=False (pre-padded) path"
        self.n_fft = filter_length
        self.hop = hop_length
        self.win = win_length
        self.n_mel = n_mel_channels
        self.n_freq = filter_length // 2 + 1
        self.n_mel_pad = _round_up(n_mel_channels, 128)
        self.frame_tile = int(frame_tile)
        self.compute_dtype = compute_dtype
        # full-f32 parity path uses HIGHEST precision matmuls; bf16 path uses the MXU natively
        self.precision = (jax.lax.Precision.HIGHEST
                          if np.dtype(compute_dtype) == np.dtype(np.float32) else None)

        # hann window (torch.hann_window default, periodic), zero-pad-center to n_fft
        n = np.arange(win_length, dtype=np.float64)
        hann = 0.5 * (1.0 - np.cos(2.0 * np.pi * n / win_length))
        pad_l = (filter_length - win_length) // 2
        window = np.zeros(filter_length, dtype=np.float64)
        window[pad_l:pad_l + win_length] = hann

        # mel filterbank (librosa-equivalent)
        mel = mel_filterbank(sampling_rate, filter_length, n_mel_channels,
                             mel_fmin, mel_fmax)                       # (n_mel, n_freq)

        nn = np.arange(filter_length, dtype=np.float64)[:, None]
        n_half = filter_length // 2
        # Nyquist packing only when the low bins already fill whole lanes.
        self.nyq_packed = (filter_length % 2 == 0) and (n_half % 128 == 0)

        if self.nyq_packed:
            W = n_half
            kk = np.arange(W, dtype=np.float64)[None, :]
            ang = 2.0 * np.pi * nn * kk / filter_length
            cos_b = np.cos(ang) * window[:, None]                      # window folded in
            sin_b = -np.sin(ang) * window[:, None]                     # col 0 is all zero
            # fold the Nyquist cos column ((-1)^n) into the all-zero sin column 0
            sin_b[:, 0] = ((-1.0) ** np.arange(filter_length)) * window
            basis = np.concatenate([cos_b, sin_b], axis=1)             # (n_fft, 2W)
            self.spec_w = W + 128                                      # Nyquist mag at col W
            melT = np.zeros((self.spec_w, self.n_mel_pad), dtype=np.float64)
            melT[:W, :self.n_mel] = mel[:, :W].T
            melT[W, :self.n_mel] = mel[:, W]                           # Nyquist mel weights
        else:
            n_freq_pad = _round_up(self.n_freq, 128)
            kk = np.arange(self.n_freq, dtype=np.float64)[None, :]
            ang = 2.0 * np.pi * nn * kk / filter_length
            cos_b = np.zeros((filter_length, n_freq_pad), dtype=np.float64)
            sin_b = np.zeros((filter_length, n_freq_pad), dtype=np.float64)
            cos_b[:, :self.n_freq] = np.cos(ang) * window[:, None]
            sin_b[:, :self.n_freq] = -np.sin(ang) * window[:, None]
            basis = np.concatenate([cos_b, sin_b], axis=1)             # (n_fft, 2*n_freq_pad)
            self.spec_w = n_freq_pad
            melT = np.zeros((self.spec_w, self.n_mel_pad), dtype=np.float64)
            melT[:self.n_freq, :self.n_mel] = mel.T

        self.basis = jnp.asarray(basis, dtype=compute_dtype)
        self.melT = jnp.asarray(melT, dtype=compute_dtype)

    def _pick_tile(self, nf_rows):
        # multiple of 8 sublanes, at most frame_tile, and (when possible) at least
        # 2 grid steps so the single "parallel" axis shards over v7x's 2 TensorCores
        half = (_round_up(nf_rows, 8) // 2) // 8 * 8
        return max(8, min(self.frame_tile, max(8, half)))

    def __call__(self, y):
        # y: (B, T) float32 in [-1, 1]
        B, T = y.shape
        pad = (self.n_fft - self.hop) // 2
        assert pad < T, "input too short for reflect padding"
        y_pad = jnp.pad(y, ((0, 0), (pad, pad)), mode="reflect")
        T_pad = T + 2 * pad
        n_frames = 1 + (T_pad - self.n_fft) // self.hop

        # frame extraction (the hann window is folded into the DFT basis)
        # TODO(synk): framing is still an XLA gather (n_fft/hop duplication in HBM);
        # moving it in-kernel via manual DMA of contiguous sample chunks is a further win.
        starts = jnp.arange(n_frames) * self.hop
        idx = starts[:, None] + jnp.arange(self.n_fft)[None, :]        # (n_frames, n_fft)
        frames = y_pad[:, idx].reshape(B * n_frames, self.n_fft)
        frames = frames.astype(self.compute_dtype)

        NF = B * n_frames
        tile = self._pick_tile(NF)
        NF_pad = _round_up(NF, tile)
        if NF_pad != NF:
            frames = jnp.pad(frames, ((0, NF_pad - NF), (0, 0)))

        spec_p, mel_p = stft_mel_pallas(frames, self.basis, self.melT,
                                        self.spec_w, tile,
                                        self.nyq_packed, self.precision)

        # single fused slice+reshape+transpose back to the torch (B, F, T) layout
        spec = spec_p[:NF, :self.n_freq].reshape(B, n_frames, self.n_freq).transpose(0, 2, 1)
        mel = mel_p[:NF, :self.n_mel].reshape(B, n_frames, self.n_mel).transpose(0, 2, 1)
        return spec, mel


if __name__ == "__main__":
    # small, deterministic config
    filter_length = 256
    hop_length = 64
    win_length = 256
    n_mel_channels = 20
    sampling_rate = 16000
    mel_fmin = 0.0
    mel_fmax = 8000
    B, T = 2, 512

    module = TacotronSTFTPallas(filter_length, hop_length, win_length,
                                n_mel_channels, sampling_rate,
                                center=False, mel_fmax=mel_fmax, mel_fmin=mel_fmin)

    key = jax.random.PRNGKey(0)
    y = jax.random.uniform(key, (B, T), dtype=jnp.float32, minval=-1.0, maxval=1.0)

    spec, mel = module(y)
    spec = jax.block_until_ready(spec)
    mel = jax.block_until_ready(mel)

    pad = (filter_length - hop_length) // 2
    n_frames = 1 + (T + 2 * pad - filter_length) // hop_length
    assert spec.shape == (B, filter_length // 2 + 1, n_frames), spec.shape
    assert mel.shape == (B, n_mel_channels, n_frames), mel.shape
    assert bool(jnp.all(jnp.isfinite(spec))) and bool(jnp.all(jnp.isfinite(mel)))
    print("KERNEL_OK")
</pallas_src>

<mosaic_0001>
module attributes {stable_mosaic.version = 11 : i64} {
  func.func @stft_mel_kernel(%arg0: i32, %arg1: memref<8x256xbf16, #tpu.memory_space<vmem>>, %arg2: memref<256x256xbf16, #tpu.memory_space<vmem>>, %arg3: memref<256x128xbf16, #tpu.memory_space<vmem>>, %arg4: memref<8x256xf32, #tpu.memory_space<vmem>>, %arg5: memref<8x128xf32, #tpu.memory_space<vmem>>) attributes {dimension_semantics = [#tpu.dimension_semantics<parallel>], iteration_bounds = array<i64: 2>, scalar_prefetch = 0 : i64, scratch_operands = 0 : i64, tpu.core_type = #tpu.core_type<tc>, window_params = [{transform_indices = @transform_0, window_bounds = array<i64: 8, 256>}, {pipeline_mode = #tpu.pipeline_mode<synchronous>, transform_indices = @transform_1, window_bounds = array<i64: 256, 256>}, {pipeline_mode = #tpu.pipeline_mode<synchronous>, transform_indices = @transform_2, window_bounds = array<i64: 256, 128>}, {transform_indices = @transform_3, window_bounds = array<i64: 8, 256>}, {transform_indices = @transform_4, window_bounds = array<i64: 8, 128>}]} {
    %c0 = arith.constant 0 : index
    %c0_0 = arith.constant 0 : index
    %0 = vector.load %arg1[%c0, %c0_0] : memref<8x256xbf16, #tpu.memory_space<vmem>>, vector<8x256xbf16>
    %c0_1 = arith.constant 0 : index
    %c0_2 = arith.constant 0 : index
    %1 = vector.load %arg2[%c0_1, %c0_2] : memref<256x256xbf16, #tpu.memory_space<vmem>>, vector<256x256xbf16>
    %cst = arith.constant dense<0.000000e+00> : vector<8x256xf32>
    %2 = tpu.matmul %0, %1, %cst {dimension_numbers = #tpu.dot_dimension_numbers<[1], [0], [0], [1], [0, 0, 1, 1], [], []>} : vector<8x256xbf16>, vector<256x256xbf16>, vector<8x256xf32> -> vector<8x256xf32>
    %3 = vector.extract_strided_slice %2 {offsets = [0, 0], sizes = [8, 128], strides = [1, 1]} : vector<8x256xf32> to vector<8x128xf32>
    %4 = vector.extract_strided_slice %2 {offsets = [0, 128], sizes = [8, 128], strides = [1, 1]} : vector<8x256xf32> to vector<8x128xf32>
    %5 = tpu.iota {dimensions = array<i32: 1>} : vector<8x128xi32>
    %c0_i32 = arith.constant 0 : i32
    %6 = vector.broadcast %c0_i32 : i32 to vector<8x128xi32>
    %7 = arith.cmpi eq, %5, %6 : vector<8x128xi32>
    %cst_3 = arith.constant 0.000000e+00 : f32
    %8 = vector.broadcast %cst_3 : f32 to vector<8x128xf32>
    %9 = arith.select %7, %8, %4 : vector<8x128xi1>, vector<8x128xf32>
    %10 = arith.mulf %3, %3 : vector<8x128xf32>
    %11 = arith.mulf %9, %9 : vector<8x128xf32>
    %12 = arith.addf %10, %11 : vector<8x128xf32>
    %cst_4 = arith.constant 9.99999971E-10 : f32
    %13 = vector.broadcast %cst_4 : f32 to vector<8x128xf32>
    %14 = arith.addf %12, %13 : vector<8x128xf32>
    %15 = math.sqrt %14 : vector<8x128xf32>
    %16 = arith.mulf %4, %4 : vector<8x128xf32>
    %cst_5 = arith.constant 9.99999971E-10 : f32
    %17 = vector.broadcast %cst_5 : f32 to vector<8x128xf32>
    %18 = arith.addf %16, %17 : vector<8x128xf32>
    %19 = math.sqrt %18 : vector<8x128xf32>
    %20 = tpu.concatenate %15, %19 in 1 : vector<8x128xf32>, vector<8x128xf32> -> vector<8x256xf32>
    %c0_6 = arith.constant 0 : index
    %c0_7 = arith.constant 0 : index
    %21 = vector.load %arg4[%c0_6, %c0_7] : memref<8x256xf32, #tpu.memory_space<vmem>>, vector<8x256xf32>
    tpu.vector_store %arg4[%c0_6, %c0_7], %20 {strides = array<i32>} : memref<8x256xf32, #tpu.memory_space<vmem>>, vector<8x256xf32>,
    %22 = arith.truncf %20 : vector<8x256xf32> to vector<8x256xbf16>
    %c0_8 = arith.constant 0 : index
    %c0_9 = arith.constant 0 : index
    %23 = vector.load %arg3[%c0_8, %c0_9] : memref<256x128xbf16, #tpu.memory_space<vmem>>, vector<256x128xbf16>
    %cst_10 = arith.constant dense<0.000000e+00> : vector<8x128xf32>
    %24 = tpu.matmul %22, %23, %cst_10 {dimension_numbers = #tpu.dot_dimension_numbers<[1], [0], [0], [1], [0, 0, 1, 1], [], []>} : vector<8x256xbf16>, vector<256x128xbf16>, vector<8x128xf32> -> vector<8x128xf32>
    %cst_11 = arith.constant 9.99999974E-6 : f32
    %25 = vector.broadcast %cst_11 : f32 to vector<8x128xf32>
    %26 = arith.maximumf %24, %25 : vector<8x128xf32>
    %27 = math.log %26 : vector<8x128xf32>
    %c0_12 = arith.constant 0 : index
    %c0_13 = arith.constant 0 : index
    %28 = vector.load %arg5[%c0_12, %c0_13] : memref<8x128xf32, #tpu.memory_space<vmem>>, vector<8x128xf32>
    tpu.vector_store %arg5[%c0_12, %c0_13], %27 {strides = array<i32>} : memref<8x128xf32, #tpu.memory_space<vmem>>, vector<8x128xf32>,
    return
  }
  func.func @transform_0(%arg0: i32) -> (i32, i32) {
    %c0_i32 = arith.constant 0 : i32
    %c0_i32_0 = arith.constant 0 : i32
    return %arg0, %c0_i32 : i32, i32
  }
  func.func @transform_1(%arg0: i32) -> (i32, i32) {
    %c0_i32 = arith.constant 0 : i32
    %c0_i32_0 = arith.constant 0 : i32
    %c0_i32_1 = arith.constant 0 : i32
    return %c0_i32, %c0_i32_0 : i32, i32
  }
  func.func @transform_2(%arg0: i32) -> (i32, i32) {
    %c0_i32 = arith.constant 0 : i32
    %c0_i32_0 = arith.constant 0 : i32
    %c0_i32_1 = arith.constant 0 : i32
    return %c0_i32, %c0_i32_0 : i32, i32
  }
  func.func @transform_3(%arg0: i32) -> (i32, i32) {
    %c0_i32 = arith.constant 0 : i32
    %c0_i32_0 = arith.constant 0 : i32
    return %arg0, %c0_i32 : i32, i32
  }
  func.func @transform_4(%arg0: i32) -> (i32, i32) {
    %c0_i32 = arith.constant 0 : i32
    %c0_i32_0 = arith.constant 0 : i32
    return %arg0, %c0_i32 : i32, i32
  }
}

</mosaic_0001>

<bundles_post_ra>
// kernel: tpu_custom_call.1
= control target key start
LH: loop header
LB: loop body
LE: loop exit
PB: predicated region body
PF: predicated region fallthrough
CT: control target
= control target key end

     0   :  { %10 = vsyncpa [#allocation3], 0  ;;  %s1574_s0 = inlined_call_operand.hbm [shape: bf16[16,256], index: 0, kind: input, shape index: {}]   ;;  %s1575_s1 = inlined_call_operand.hbm [shape: bf16[256,256], index: 1, kind: input, shape index: {}]   ;;  %s1576_s2 = inlined_call_operand.hbm [shape: bf16[256,128], index: 2, kind: input, shape index: {}]   ;;  %s1577_s3 = inlined_call_operand.hbm [shape: f32[16,256], index: 3, kind: output, shape index: {0}]   ;;  %s1578_s4 = inlined_call_operand.hbm [shape: f32[16,128], index: 4, kind: output, shape index: {1}]  }
   0x1   :  { %12 = vsyncpa [#allocation3 + $0x1], 0 }
   0x2   :  { %13 = vsyncpa [#allocation6], 0 }
   0x3   :  { %14 = vsyncpa [#allocation4], 0 }
   0x4   :  { %16 = vsyncpa [#allocation4 + $0x1], 0 }
   0x5   :  { %17 = vsyncpa [#allocation10], 0 }
   0x6   :  { %19 = vsyncpa [#allocation10 + $0x1], 0  ;;  %s1317_s15 = smov 0   ;;  %s1319_s16 = smov 0  }
   0x7   :  { %s1321_s17 = smov 0   ;;  %s1323_s18 = smov 0  }
   0x8 LB: > { %s1338_s19 = sadd.s32 4294967295, %s1281_s18   ;;  %s850_s20 = sadd.s32 4294967294, %s1281_s18   ;;  %s1281_s18 = sphi %s1323_s18, %s1598_s18   ;;  %s1277_s17 = sphi %s1321_s17, %s1597_s17   ;;  %s1273_s16 = sphi %s1319_s16, %s1596_s16   ;;  %s1269_s15 = sphi %s1317_s15, %s1595_s15  }
   0x9   : > { %p45_p0 = scmp.ne.s32.totalorder %s1273_s16, %s1269_s15  ;;  %p1579_p1 = scmp.eq.s32.totalorder %s1338_s19, 0 }
   0xa   : > { %p117_p3 = scmp.eq.s32.totalorder %s850_s20, 1  ;;  %p851_p5 = scmp.ge.s32.totalorder %s1281_s18, 1 }
   0xb   : > { %p1347_p4 = por %p1579_p1, %p45_p0  ;;  %p150_p7 = scmp.lt.s32.totalorder %s1281_s18, 3 }
   0xc   : > { %p1352_p6 = por %p117_p3, %p45_p0  ;;  %s1283_s24 = smov [#allocation5]  }
   0xd   : > { %s1582_s21 = scalar_select %p1347_p4, 1, 0 }
   0xe   : > { %s1583_s22 = scalar_select %p1352_p6, 1, 0 }
   0xf   : > { %p1357_p8 = pnand %p851_p5, %p150_p7  ;;  %s162_s25 = sshll.u32 %s1283_s24, 4  ;;  %s1361_s25 = int_to_ptr.vmem [resolvable:$true] %s162_s25 }
  0x10   : > { %s1284_s27 = smov [#allocation7]   ;;  %s1093_s5 = scalar_lea.hbm %s1575_s1, 4096 }
  0x11   : > { %p959_p9 = pneg %p1357_p8  ;;  %s175_s28 = sshll.u32 %s1284_s27, 4  ;;  %s1372_s28 = int_to_ptr.vmem [resolvable:$true] %s175_s28 }
  0x12   : > { %p1094_p12 = scmp.ne.s32.totalorder %s1575_s1, %s1093_s5  ;;  %p1100_p5 = scmp.lt.u32.totalorder %s1093_s5, %s1575_s1 }
  0x13   : > { %p1368_p11 = pnand %p959_p9, %p1579_p1 }
  0x15   : > { %p1095_p13 = pneg %p1368_p11 }
  0x17   : > { %p1096_p0 = pnand %p1095_p13, %p1094_p12 }
  0x19   : > { %p1097_p3 = pneg %p1096_p0 }
  0x1b   : > { %p1102_p7 = pnand %p1100_p5, %p1097_p3 }
  0x1d   : > { %1105 = shalt.err (!%p1102_p7)
}
  0x1e   : > { %s1106_s10 = scalar_lea.vmem %s1361_s25, 4096  ;;  %p1114_p2 = scmp.lt.s32.totalorder %s1361_s25, %s1361_s25 }
  0x1f   : > { %p1107_p9 = scmp.ne.s32.totalorder %s1361_s25, %s1106_s10  ;;  %p1115_p12 = scmp.lt.s32.totalorder %s1106_s10, %s1106_s10 }
  0x21   : > { %p1109_p10 = pnand %p1107_p9, %p1095_p13  ;;  %p1116_p0 = por %p1115_p12, %p1114_p2 }
  0x23   : > { %p1110_p1 = pneg %p1109_p10 }
  0x25   : > { %p1117_p6 = pnand %p1116_p0, %p1110_p1 }
  0x27   : > { %1120 = shalt.err (!%p1117_p6)
}
  0x28   : > { %s1285_s11 = smov 128   ;;  %s1286_s12 = smov 8  }
  0x29   : > { %962 = dma.hbm_to_vmem [thread:$0]  (!%p1368_p11), %s1575_s1, 4096, %s1361_s25, [#allocation6], %s1285_s11, %s1285_s11, %s1286_s12  }
  0x2a   : > { %s1121_s27 = scalar_lea.hbm %s1576_s2, 2048 }
  0x2b   : > { %p1122_p2 = scmp.ne.s32.totalorder %s1576_s2, %s1121_s27  ;;  %p1128_p10 = scmp.lt.u32.totalorder %s1121_s27, %s1576_s2 }
  0x2d   : > { %p1124_p1 = pnand %p1122_p2, %p1095_p13 }
  0x2f   : > { %p1125_p6 = pneg %p1124_p1 }
  0x31   : > { %p1130_p3 = pnand %p1128_p10, %p1125_p6 }
  0x33   : > { %1133 = shalt.err (!%p1130_p3)
}
  0x34   : > { %s1134_s25 = scalar_lea.vmem %s1372_s28, 2048  ;;  %p1142_p12 = scmp.lt.s32.totalorder %s1372_s28, %s1372_s28 }
  0x35   : > { %p1135_p5 = scmp.ne.s32.totalorder %s1372_s28, %s1134_s25  ;;  %p1143_p0 = scmp.lt.s32.totalorder %s1134_s25, %s1134_s25 }
  0x37   : > { %p1137_p7 = pnand %p1135_p5, %p1095_p13  ;;  %p1144_p2 = por %p1143_p0, %p1142_p12 }
  0x39   : > { %p1138_p9 = pneg %p1137_p7 }
  0x3b   : > { %p1145_p1 = pnand %p1144_p2, %p1138_p9 }
  0x3d   : > { %1148 = shalt.err (!%p1145_p1)
}
  0x3e   : > { %s1287_s7 = smov 64   ;;  %s1288_s8 = smov 4  }
  0x3f   : > { %965 = dma.hbm_to_vmem [thread:$0]  (!%p1368_p11), %s1576_s2, 2048, %s1372_s28, [#allocation6], %s1287_s7, %s1287_s7, %s1288_s8  }
  0x40   : > { %s1427_s11 = sadd.s32 1, %s1281_s18   ;;  %s32_s13 = sadd.s32 1, %s1277_s17 }
  0x41   : > { %s29_s12 = ssub.s32 %s1281_s18, %s1427_s11  ;;  %p39_p6 = scmp.ne.s32.totalorder %s1277_s17, %s1273_s16 }
  0x42   : > { %p30_p13 = scmp.eq.s32.totalorder %s29_s12, 0  ;;  %p40_p10 = scmp.eq.s32.totalorder %s1281_s18, 0 }
  0x43   : > { %p1586_p5 = scmp.eq.s32.totalorder %s1338_s19, 1  ;;  %p979_p9 = scmp.lt.s32.totalorder %s1281_s18, 2 }
  0x44   : > { %s1436_s14 = scalar_select %p30_p13, %s1277_s17, %s32_s13  }
  0x45   : > { %p41_p3 = por %p40_p10, %p39_p6  ;;  %p1440_p7 = por %p1586_p5, %p39_p6 }
  0x46   : > { %s189_s26 = sand.u32 1, %s1277_s17   ;;  %s921_s28 = sshll.u32 %s1281_s18, 7 }
  0x47   : > { %s1587_s20 = scalar_select %p1440_p7, 1, 0 }
  0x48   : > { %s855_s24 = sshll.u32 %s189_s26, 3  ;;  %s1450_s30 = scalar_lea.hbm %s1574_s0, %s921_s28 }
  0x49   : > { %s193_s5 = scalar_lea.vmem [#allocation2], %s855_s24  ;;  %p1454_p11 = pnand %p979_p9, %p41_p3 }
  0x4a   : > { %s201_s6 = sshll.u32 %s193_s5, 4  ;;  %s190_s7 = scalar_lea.sflag [#allocation3], %s189_s26  ;;  %s1452_s6 = int_to_ptr.vmem [resolvable:$true] %s201_s6 }
  0x4b   : > { %s1149_s8 = scalar_lea.hbm %s1450_s30, 128  ;;  %p1151_p0 = pneg %p1454_p11 }
  0x4c   : > { %p1150_p12 = scmp.ne.s32.totalorder %s1450_s30, %s1149_s8  ;;  %s1154_s12 = scalar_lea.hbm %s1574_s0, 256 }
  0x4d   : > { %p1155_p13 = scmp.lt.u32.totalorder %s1450_s30, %s1574_s0  ;;  %p1156_p6 = scmp.lt.u32.totalorder %s1154_s12, %s1149_s8 }
  0x4e   : > { %p1152_p2 = pnand %p1151_p0, %p1150_p12  ;;  %p1158_p3 = scmp.lt.u32.totalorder %s1149_s8, %s1450_s30 }
  0x4f   : > { %p1157_p10 = por %p1156_p6, %p1155_p13 }
  0x50   : > { %p1153_p1 = pneg %p1152_p2 }
  0x51   : > { %p1159_p5 = por %p1158_p3, %p1157_p10 }
  0x53   : > { %p1160_p9 = pnand %p1159_p5, %p1153_p1 }
  0x55   : > { %1163 = shalt.err (!%p1160_p9)
}
  0x56   : > { %s1164_s26 = scalar_lea.vmem %s1452_s6, 128  ;;  %s1289_s28 = smov [#allocation2]  }
  0x57   : > { %p1165_p12 = scmp.ne.s32.totalorder %s1452_s6, %s1164_s26  ;;  %s1169_s27 = sshll.u32 %s1289_s28, 4  ;;  %s1170_s27 = int_to_ptr.vmem [resolvable:$false] %s1169_s27 }
  0x58   : > { %s1171_s29 = scalar_lea.vmem %s1170_s27, 256  ;;  %p1172_p4 = scmp.lt.s32.totalorder %s1452_s6, %s1170_s27 }
  0x59   : > { %p1167_p2 = pnand %p1165_p12, %p1151_p0  ;;  %p1173_p13 = scmp.lt.s32.totalorder %s1171_s29, %s1164_s26 }
  0x5b   : > { %p1168_p7 = pneg %p1167_p2  ;;  %p1174_p6 = por %p1173_p13, %p1172_p4 }
  0x5d   : > { %p1175_p10 = pnand %p1174_p6, %p1168_p7 }
  0x5f   : > { %1178 = shalt.err (!%p1175_p10)
}
  0x60   : > { %969 = dma.hbm_to_vmem [thread:$0]  (!%p1454_p11), %s1450_s30, 128, %s1452_s6, %s190_s7  }
  0x61   : > { %210 = sbr.rel (%p1357_p8) target bundleno = 654 (0x28e), region = 32  ;;  %s1486_s5 = sand.u32 (!%p1357_p8), 1, %s1273_s16  }
  0x62   : > { %s859_s8 = sshll.u32 (!%p1357_p8), %s1486_s5, 3  ;;  %s213_s9 = scalar_lea.sflag (!%p1357_p8), [#allocation3], %s1486_s5 }
  0x63   : > { %s216_s10 = scalar_lea.vmem (!%p1357_p8), [#allocation2], %s859_s8  ;;  %p1589_p4 = scmp.ne.s32.totalorder (!%p1357_p8), %s1582_s21, 0 }
  0x68   : > { %1252 = dma.done.wait (%p1589_p4), %s213_s9, 128  }
  0x69   : > { %1254 = vsyncadd (%p1589_p4), %s213_s9, 4294967168  ;;  %p1590_p7 = scmp.eq.s32.totalorder %s1338_s19, 0 }
  0x6b   : > { %1256 = dma.done.wait (%p1590_p7), [#allocation6], 6144   ;;  %p1591_p8 = pmov %p1590_p7 }
  0x6c   : > { %v1021_v0 = vld [vmem:[#allocation5 + $0x4] ss:$8 sps:$4 sm:$0xff]   ;;  %v1023_v1 = vld [vmem:[#allocation5] ss:$8 sps:$4 sm:$0xff]   ;;  %v1024_v2 = vld [vmem:[#allocation5 + $0x14] ss:$8 sps:$4 sm:$0xff]   ;;  %v496_v51 = vlaneseq }
  0x6d   : > { %1258 = vsyncadd (%p1591_p8), [#allocation6], 4294961152  ;;  %455 = vmatprep.subr.bf16.mxu0 %v1021_v0  ;;  %v1026_v3 = vld [vmem:[#allocation5 + $0x10] ss:$8 sps:$4 sm:$0xff]   ;;  %v1027_v4 = vld [vmem:[#allocation5 + $0x24] ss:$8 sps:$4 sm:$0xff]  }
  0x6e   : > { %456 = vmatpush1.bf16.msra.mxu0 %v1023_v1  ;;  %v1029_v5 = vld [vmem:[#allocation5 + $0x20] ss:$8 sps:$4 sm:$0xff]   ;;  %v1030_v6 = vld [vmem:[#allocation5 + $0x34] ss:$8 sps:$4 sm:$0xff]   ;;  %v1032_v7 = vld [vmem:[#allocation5 + $0x30] ss:$8 sps:$4 sm:$0xff]  }
  0x6f   : > { %457 = vmatprep.subr.bf16.mxu0 %v1024_v2  ;;  %v1033_v8 = vld [vmem:[#allocation5 + $0x44] ss:$8 sps:$4 sm:$0xff]   ;;  %v1035_v9 = vld [vmem:[#allocation5 + $0x40] ss:$8 sps:$4 sm:$0xff]   ;;  %v1036_v10 = vld [vmem:[#allocation5 + $0x54] ss:$8 sps:$4 sm:$0xff]  }
  0x70   : > { %v1038_v11 = vld [vmem:[#allocation5 + $0x50] ss:$8 sps:$4 sm:$0xff]   ;;  %v1039_v12 = vld [vmem:[#allocation5 + $0x64] ss:$8 sps:$4 sm:$0xff]   ;;  %v1041_v13 = vld [vmem:[#allocation5 + $0x60] ss:$8 sps:$4 sm:$0xff]  }
  0x71   : > { %v255_v14 = vld [vmem:[%s216_s10] sm:$0xff]  ;;  %v1071_v17 = vld [vmem:[#allocation7 + $0x40] sm:$0xff]   ;;  %v1073_v19 = vld [vmem:[#allocation7 + $0x48] sm:$0xff]   ;;  %v497_v52 = vand.u32 127, %v496_v51  ;;  %s862_s21 = sshll.u32 %s1486_s5, 4  ;;  %s922_s6 = sshll.u32 %s1338_s19, 8 }
  0x72   : > { %458 = vmatpush1.bf16.msra.mxu0 %v1026_v3  ;;  %v1042_v15 = vld [vmem:[#allocation5 + $0x74] ss:$8 sps:$4 sm:$0xff]   ;;  %v865_v16 = vcombine.high %v255_v14, %v255_v14  ;;  %v1072_v18 = vld [vmem:[#allocation7] sm:$0xff]   ;;  %v1044_v20 = vld [vmem:[#allocation5 + $0x70] ss:$8 sps:$4 sm:$0xff]   ;;  %923 = vmatprep.subr.bf16.mxu1 %v1071_v17  ;;  %v864_v38 = vcombine.low %v255_v14, %v255_v14  ;;  %s246_s23 = scalar_lea.vmem [#allocation8], %s862_s21  ;;  %s714_s12 = scalar_lea.hbm %s1577_s3, %s922_s6 }
  0x73   : > { %459 = vmatprep.subr.bf16.mxu0 %v1027_v4  ;;  %v1074_v21 = vld [vmem:[#allocation7 + $0x8] sm:$0xff]   ;;  %924 = vmatpush3.bf16.msra.mxu1 %v1072_v18  ;;  %v1048_v24 = vld [vmem:[#allocation5 + $0x94] ss:$8 sps:$4 sm:$0xff]   ;;  %v1050_v25 = vld [vmem:[#allocation5 + $0x90] ss:$8 sps:$4 sm:$0xff]   ;;  %vm498_vm0 = vcmp.eq.s32.totalorder %v497_v52, 0 }
  0x74   : > { %487 = vmatprep.mubr.bf16.mxu0 %v865_v16  ;;  %v1045_v22 = vld [vmem:[#allocation5 + $0x84] ss:$8 sps:$4 sm:$0xff]   ;;  %925 = vmatprep.subr.bf16.mxu1 %v1073_v19  ;;  %v1047_v23 = vld [vmem:[#allocation5 + $0x80] ss:$8 sps:$4 sm:$0xff]   ;;  %v1054_v28 = vld [vmem:[#allocation5 + $0xb4] ss:$8 sps:$4 sm:$0xff]  }
  0x75   : > { %v1051_v26 = vld [vmem:[#allocation5 + $0xa4] ss:$8 sps:$4 sm:$0xff]   ;;  %v1053_v27 = vld [vmem:[#allocation5 + $0xa0] ss:$8 sps:$4 sm:$0xff]   ;;  %v1056_v29 = vld [vmem:[#allocation5 + $0xb0] ss:$8 sps:$4 sm:$0xff]  }
  0x76   : > { %460 = vmatpush1.bf16.msra.mxu0 %v1029_v5  ;;  %v1057_v30 = vld [vmem:[#allocation5 + $0xc4] ss:$8 sps:$4 sm:$0xff]   ;;  %v1059_v31 = vld [vmem:[#allocation5 + $0xc0] ss:$8 sps:$4 sm:$0xff]   ;;  %v1060_v32 = vld [vmem:[#allocation5 + $0xd4] ss:$8 sps:$4 sm:$0xff]  }
  0x77   : > { %461 = vmatprep.subr.bf16.mxu0 %v1030_v6  ;;  %926 = vmatpush3.bf16.msra.mxu1 %v1074_v21  ;;  %v1062_v33 = vld [vmem:[#allocation5 + $0xd0] ss:$8 sps:$4 sm:$0xff]   ;;  %v1063_v34 = vld [vmem:[#allocation5 + $0xe4] ss:$8 sps:$4 sm:$0xff]   ;;  %v1065_v35 = vld [vmem:[#allocation5 + $0xe0] ss:$8 sps:$4 sm:$0xff]  }
  0x78   : > { %v1066_v36 = vld [vmem:[#allocation5 + $0xf4] ss:$8 sps:$4 sm:$0xff]   ;;  %v1068_v37 = vld [vmem:[#allocation5 + $0xf0] ss:$8 sps:$4 sm:$0xff]   ;;  %v1079_v43 = vld [vmem:[#allocation7 + $0x60] sm:$0xff]   ;;  %s716_s30 = sshll.u32 %s246_s23, 4  ;;  %s1501_s30 = int_to_ptr.vmem [resolvable:$true] %s716_s30 }
  0x79   : > { %v1075_v39 = vld [vmem:[#allocation7 + $0x50] sm:$0xff]   ;;  %v1077_v41 = vld [vmem:[#allocation7 + $0x58] sm:$0xff]   ;;  %v1080_v44 = vld [vmem:[#allocation7 + $0x20] sm:$0xff]   ;;  %s697_s13 = scalar_lea.sflag [#allocation4], %s1486_s5  ;;  %s1179_s24 = scalar_lea.vmem %s1501_s30, 256 }
  0x7a   : > { %462 = vmatpush1.bf16.msra.mxu0 %v1032_v7  ;;  %v1076_v40 = vld [vmem:[#allocation7 + $0x10] sm:$0xff]   ;;  %927 = vmatprep.subr.bf16.mxu1 %v1075_v39  ;;  %v1078_v42 = vld [vmem:[#allocation7 + $0x18] sm:$0xff]   ;;  %v1081_v45 = vld [vmem:[#allocation7 + $0x68] sm:$0xff]   ;;  %p1180_p11 = scmp.ne.s32.totalorder %s1501_s30, %s1179_s24  ;;  %p1592_p0 = scmp.ne.s32.totalorder %s1587_s20, 0 }
  0x7b   : > { %463 = vmatprep.subr.bf16.mxu0 %v1033_v8  ;;  %928 = vmatpush3.bf16.msra.mxu1 %v1076_v40  ;;  %v1082_v46 = vld [vmem:[#allocation7 + $0x28] sm:$0xff]   ;;  %v1083_v47 = vld [vmem:[#allocation7 + $0x70] sm:$0xff]   ;;  %v1085_v49 = vld [vmem:[#allocation7 + $0x78] sm:$0xff]   ;;  %s1290_s26 = smov [#allocation8]  }
  0x7c   : > { %929 = vmatprep.subr.bf16.mxu1 %v1077_v41  ;;  %v1084_v48 = vld [vmem:[#allocation7 + $0x30] sm:$0xff]   ;;  %v1086_v50 = vld [vmem:[#allocation7 + $0x38] sm:$0xff]   ;;  %p1181_p1 = pnand %p1180_p11, %p1592_p0  ;;  %s1183_s28 = sshll.u32 %s1290_s26, 4  ;;  %s1184_s28 = int_to_ptr.vmem [resolvable:$false] %s1183_s28 }
  0x7d   : > { %s1185_s27 = scalar_lea.vmem %s1184_s28, 512  ;;  %p1186_p5 = scmp.lt.s32.totalorder %s1501_s30, %s1184_s28 }
  0x7e   : > { %464 = vmatpush1.bf16.msra.mxu0 %v1035_v9  ;;  %p1182_p3 = pneg %p1181_p1  ;;  %p1187_p9 = scmp.lt.s32.totalorder %s1185_s27, %s1179_s24 }
  0x7f   : > { %465 = vmatprep.subr.bf16.mxu0 %v1036_v10  ;;  %930 = vmatpush3.bf16.msra.mxu1 %v1078_v42 }
  0x80   : > { %931 = vmatprep.subr.bf16.mxu1 %v1079_v43  ;;  %p1188_p12 = por %p1187_p9, %p1186_p5 }
  0x82   : > { %466 = vmatpush1.bf16.msra.mxu0 %v1038_v11  ;;  %p1189_p2 = pnand %p1188_p12, %p1182_p3 }
  0x83   : > { %467 = vmatprep.subr.bf16.mxu0 %v1039_v12  ;;  %932 = vmatpush3.bf16.msra.mxu1 %v1080_v44 }
  0x84   : > { %933 = vmatprep.subr.bf16.mxu1 %v1081_v45 }
  0x86   : > { %468 = vmatpush1.bf16.msra.mxu0 %v1041_v13 }
  0x87   : > { %469 = vmatprep.subr.bf16.mxu0 %v1042_v15  ;;  %934 = vmatpush3.bf16.msra.mxu1 %v1082_v46 }
  0x88   : > { %935 = vmatprep.subr.bf16.mxu1 %v1083_v47 }
  0x8a   : > { %470 = vmatpush1.bf16.msra.mxu0 %v1044_v20 }
  0x8b   : > { %471 = vmatprep.subr.bf16.mxu0 %v1045_v22  ;;  %936 = vmatpush3.bf16.msra.mxu1 %v1084_v48 }
  0x8c   : > { %937 = vmatprep.subr.bf16.mxu1 %v1085_v49 }
  0x8e   : > { %472 = vmatpush1.bf16.msra.mxu0 %v1047_v23 }
  0x8f   : > { %473 = vmatprep.subr.bf16.mxu0 %v1048_v24  ;;  %938 = vmatpush3.bf16.msra.mxu1 %v1086_v50 }
  0x92   : > { %474 = vmatpush1.bf16.msra.mxu0 %v1050_v25 }
  0x93   : > { %475 = vmatprep.subr.bf16.mxu0 %v1051_v26 }
  0x96   : > { %476 = vmatpush1.bf16.msra.mxu0 %v1053_v27 }
  0x97   : > { %477 = vmatprep.subr.bf16.mxu0 %v1054_v28 }
  0x9a   : > { %478 = vmatpush1.bf16.msra.mxu0 %v1056_v29 }
  0x9b   : > { %479 = vmatprep.subr.bf16.mxu0 %v1057_v30 }
  0x9e   : > { %480 = vmatpush1.bf16.msra.mxu0 %v1059_v31 }
  0x9f   : > { %481 = vmatprep.subr.bf16.mxu0 %v1060_v32 }
  0xa2   : > { %482 = vmatpush1.bf16.msra.mxu0 %v1062_v33 }
  0xa3   : > { %483 = vmatprep.subr.bf16.mxu0 %v1063_v34 }
  0xa6   : > { %484 = vmatpush1.bf16.msra.mxu0 %v1065_v35 }
  0xa7   : > { %485 = vmatprep.subr.bf16.mxu0 %v1066_v36 }
  0xaa   : > { %486 = vmatpush1.bf16.msra.mxu0 %v1068_v37 }
  0xad   : > { %488 = vmatmul.mubr.bf16.vlgmr.msra.gmra.mrb[0].mxu0 %v864_v38 }
 0x180   : > { %v489_v53 = vpop.f32.mrb[0].mxu0 }
 0x181   : > { %v491_v54 = vpop.f32.mrb[1].mxu0  ;;  %v500_v58 = vmul.f32 %v489_v53, %v489_v53 }
 0x182   : > { %v499_v55 = vsel %vm498_vm0, 0.0, %v491_v54  ;;  %v511_v56 = vmul.f32 %v491_v54, %v491_v54  ;;  %v493_v57 = vpop.f32.mrb[2].mxu0 }
 0x183   : > { %v501_v59 = vmul.f32 %v499_v55, %v499_v55  ;;  %v494_v60 = vpop.f32.mrb[3].mxu0 }
 0x184   : > { %v512_v61 = vadd.f32 1e-09, %v511_v56 }
 0x185   : > { %v502_v62 = vadd.f32 %v501_v59, %v500_v58 }
 0x186   : > { %1087 = vrsqrt.f32 %v512_v61  ;;  %vm515_vm1 = vcmp.eq.f32.partialorder %v512_v61, inf  ;;  %v518_v2 = vand.u32 2147483648, %v512_v61  ;;  %vm517_vm2 = vcmp.eq.f32.partialorder %v512_v61, 0.0 }
 0x187   : > { %v503_v63 = vadd.f32 1e-09, %v502_v62 }
 0x189   : > { %1089 = vrsqrt.f32 %v503_v63  ;;  %vm506_vm3 = vcmp.eq.f32.partialorder %v503_v63, inf  ;;  %v509_v8 = vand.u32 2147483648, %v503_v63  ;;  %vm508_vm4 = vcmp.eq.f32.partialorder %v503_v63, 0.0 }
 0x190   : > { %v1088_v0 = vpop.eup %1087 }
 0x191   : > { %v514_v1 = vmul.f32 %v1088_v0, %v512_v61 }
 0x193   : > { %v1090_v3 = vpop.eup %1089  ;;  %v516_v4 = vsel %vm515_vm1, %v512_v61, %v514_v1 }
 0x194   : > { %v519_v5 = vsel %vm517_vm2, %v518_v2, %v516_v4  ;;  %v505_v6 = vmul.f32 %v1090_v3, %v503_v63 }
 0x195   : > { %521 = vst [vmem:[%s246_s23 + $0x8] sm:$0xff] %v519_v5  ;;  %v523_v7 = vpack.c.bf16 %v519_v5, %v519_v5 }
 0x196   : > { %v507_v9 = vsel %vm506_vm3, %v503_v63, %v505_v6 }
 0x197   : > { %684 = vmatprep.mubr.bf16.mxu1 %v523_v7  ;;  %v510_v10 = vsel %vm508_vm4, %v509_v8, %v507_v9 }
 0x198   : > { %520 = vst [vmem:[%s246_s23] sm:$0xff] %v510_v10  ;;  %v522_v11 = vpack.c.bf16 %v510_v10, %v510_v10 }
 0x19a   : > { %685 = vmatmul.mubr.bf16.vlgmr.msra.gmra.mrb[0].mxu1 %v522_v11 }
 0x19b   : > { %1192 = shalt.err (!%p1189_p2)
}
 0x19c   : > { %s1193_s29 = scalar_lea.hbm %s714_s12, 256  ;;  %s1197_s21 = scalar_lea.hbm %s1577_s3, 512 }
 0x19d   : > { %p1194_p13 = scmp.ne.s32.totalorder %s714_s12, %s1193_s29  ;;  %p1198_p4 = scmp.lt.u32.totalorder %s714_s12, %s1577_s3 }
 0x19e   : > { %p1199_p7 = scmp.lt.u32.totalorder %s1197_s21, %s1193_s29  ;;  %p1201_p11 = scmp.lt.u32.totalorder %s1193_s29, %s714_s12 }
 0x19f   : > { %p1195_p6 = pnand %p1194_p13, %p1592_p0 }
 0x1a0   : > { %p1200_p8 = por %p1199_p7, %p1198_p4 }
 0x1a1   : > { %p1196_p10 = pneg %p1195_p6 }
 0x1a2   : > { %p1202_p1 = por %p1201_p11, %p1200_p8 }
 0x1a4   : > { %p1203_p3 = pnand %p1202_p1, %p1196_p10 }
 0x1a6   : > { %1206 = shalt.err (!%p1203_p3)
}
 0x1a7   : > { %955 = dma.vmem_to_hbm [thread:$0]  (%p1592_p0), %s1501_s30, 256, %s714_s12, %s697_s13  }
 0x1a8   : > { %s918_s25 = sshll.u32 %s1338_s19, 7  ;;  %s253_s7 = scalar_lea.vmem [#allocation9], %s859_s8 }
 0x1a9   : > { %s729_s24 = sshll.u32 %s253_s7, 4  ;;  %s1530_s27 = scalar_lea.hbm %s1578_s4, %s918_s25  ;;  %s1532_s24 = int_to_ptr.vmem [resolvable:$true] %s729_s24 }
 0x1aa   : > { %s702_s30 = scalar_lea.sflag [#allocation10], %s1486_s5  ;;  %s1207_s12 = scalar_lea.vmem %s1532_s24, 128 }
 0x1ab   : > { %p1208_p5 = scmp.ne.s32.totalorder %s1532_s24, %s1207_s12  ;;  %s1291_s19 = smov [#allocation9]  }
 0x1ac   : > { %s1211_s8 = sshll.u32 %s1291_s19, 4  ;;  %s1212_s8 = int_to_ptr.vmem [resolvable:$false] %s1211_s8 }
 0x1ad   : > { %p1209_p9 = pnand %p1208_p5, %p1592_p0  ;;  %s1213_s13 = scalar_lea.vmem %s1212_s8, 256 }
 0x1ae   : > { %p1214_p2 = scmp.lt.s32.totalorder %s1532_s24, %s1212_s8  ;;  %p1215_p13 = scmp.lt.s32.totalorder %s1213_s13, %s1207_s12 }
 0x1af   : > { %p1210_p12 = pneg %p1209_p9 }
 0x1b0   : > { %p1216_p6 = por %p1215_p13, %p1214_p2 }
 0x1b2   : > { %p1217_p10 = pnand %p1216_p6, %p1210_p12 }
 0x26d   : > { %v939_v12 = vpop.f32.mrb[0].mxu1 }
 0x26e   : > { %v940_v13 = vpop.f32.mrb[1].mxu1 }
 0x26f   : > { %v941_v14 = vadd.f32 %v940_v13, %v939_v12  ;;  %v942_v15 = vpop.f32.mrb[2].mxu1 }
 0x270   : > { %v943_v16 = vpop.f32.mrb[3].mxu1 }
 0x271   : > { %v692_v17 = vmax.f32 %v941_v14, 1e-05 }
 0x273   : > { %1091 = vlog2.f32 %v692_v17 }
 0x27d   : > { %v1092_v18 = vpop.eup %1091 }
 0x27e   : > { %v694_v19 = vmul.f32 0.6931472, %v1092_v18 }
 0x280   : > { %695 = vst [vmem:[%s253_s7] sm:$0xff] %v694_v19 }
 0x281   : > { %1220 = shalt.err (!%p1217_p10)
}
 0x282   : > { %s1221_s5 = scalar_lea.hbm %s1530_s27, 128  ;;  %s1225_s10 = scalar_lea.hbm %s1578_s4, 256 }
 0x283   : > { %p1222_p4 = scmp.ne.s32.totalorder %s1530_s27, %s1221_s5  ;;  %p1226_p11 = scmp.lt.u32.totalorder %s1530_s27, %s1578_s4 }
 0x284   : > { %p1227_p1 = scmp.lt.u32.totalorder %s1225_s10, %s1221_s5  ;;  %p1229_p5 = scmp.lt.u32.totalorder %s1221_s5, %s1530_s27 }
 0x285   : > { %p1223_p7 = pnand %p1222_p4, %p1592_p0 }
 0x286   : > { %p1228_p3 = por %p1227_p1, %p1226_p11 }
 0x287   : > { %p1224_p8 = pneg %p1223_p7 }
 0x288   : > { %p1230_p9 = por %p1229_p5, %p1228_p3 }
 0x28a   : > { %p1231_p12 = pnand %p1230_p9, %p1224_p8 }
 0x28c   : > { %1234 = shalt.err (!%p1231_p12)
}
 0x28d   : > { %956 = dma.vmem_to_hbm [thread:$0]  (%p1592_p0), %s1532_s24, 128, %s1530_s27, %s702_s30  }
 0x28e PF: > { %s741_s6 = sand.u32 1, %s1269_s15   ;;  %p1593_p2 = scmp.ne.s32.totalorder %s1583_s22, 0 }
 0x28f   : > { %p1594_p13 = scmp.ge.s32.totalorder %s1281_s18, 2  ;;  %s742_s25 = scalar_lea.sflag [#allocation4], %s741_s6 }
 0x291   : > { %p971_p6 = pnand %p1594_p13, %p1593_p2 }
 0x293   : > { %1260 = dma.done.wait (!%p971_p6), %s742_s25, 256  }
 0x294   : > { %1262 = vsyncadd (!%p971_p6), %s742_s25, 4294967040  ;;  %s751_s7 = scalar_lea.sflag [#allocation10], %s741_s6 }
 0x295   : > { %1264 = dma.done.wait (!%p971_p6), %s751_s7, 128  }
 0x296   : > { %1266 = vsyncadd (!%p971_p6), %s751_s7, 4294967168  ;;  %p22_p0 = scmp.ge.s32.totalorder %s1427_s11, 4   ;;  %s1595_s15 = smov %s1273_s16 }
 0x297   : > { %s1596_s16 = smov %s1277_s17  ;;  %s1597_s17 = smov %s1436_s14 }
 0x298   : > { %s1598_s18 = smov %s1427_s11  ;;  %24 = sbr.rel (!%p22_p0) target bundleno = 8 (0x8), region = 102 }
 0x29f   :  { %756 = vsyncpa [#allocation3], 1 }
 0x2a0   :  { %758 = vsyncpa [#allocation3 + $0x1], 1 }
 0x2a1   :  { %759 = vsyncpa [#allocation6], 1 }
 0x2a2   :  { %760 = vsyncpa [#allocation4], 1 }
 0x2a3   :  { %762 = vsyncpa [#allocation4 + $0x1], 1 }
 0x2a4   :  { %763 = vsyncpa [#allocation10], 1 }
 0x2a5   :  { %765 = vsyncpa [#allocation10 + $0x1], 1 }

</bundles_post_ra>
